<compile_context>
chip_gen: v6e
topology: v6e:2x2x1
jax: 0.10.0
libtpu: 0.0.40
codegen_flags: <defaults>
</compile_context>

<pallas_src>
import functools
import math

import jax
import jax.numpy as jnp
from jax.experimental import pallas as pl
from jax.experimental.pallas import tpu as pltpu

LN_EPS = 1e-12
_MIB = 1024 * 1024


# ----------------------------- in-kernel helpers -----------------------------

def _gelu(x):
    # tanh-approximate GELU: the transcendental runs on the EUP slot (free next to
    # the MXU/VPU).  TODO(synk): torch.nn.GELU() default is exact erf; the tanh
    # form deviates by ~1e-3 relative.
    c = 0.7978845608028654  # sqrt(2/pi)
    return 0.5 * x * (1.0 + jnp.tanh(c * (x + 0.044715 * x * x * x)))


def _ln(x, g, b, eps):
    mu = jnp.mean(x, axis=-1, keepdims=True)
    cen = x - mu
    var = jnp.mean(cen * cen, axis=-1, keepdims=True)
    return cen * jax.lax.rsqrt(var + eps) * g + b


def _recip(x):
    # approximate reciprocal on the EUP slot; fall back to a divide if unavailable.
    return pl.reciprocal(x, approx=True) if hasattr(pl, "reciprocal") else 1.0 / x


# --------------------------------- kernels -----------------------------------

def _dense_kernel(x_ref, w_ref, b_ref, *rest,
                  activation, has_residual, has_ln, ln_eps):
    """Tiled GEMM y = act(x @ W + b) [+ residual] [-> LayerNorm], K is grid axis 2."""
    o_ref = rest[-2]
    acc_ref = rest[-1]
    idx = 0
    r_ref = None
    g_ref = beta_ref = None
    if has_residual:
        r_ref = rest[idx]
        idx += 1
    if has_ln:
        g_ref, beta_ref = rest[idx], rest[idx + 1]

    @pl.when(pl.program_id(2) == 0)
    def _():
        acc_ref[...] = jnp.zeros_like(acc_ref)

    x = x_ref[...]
    if x.dtype != jnp.bfloat16:          # activations are normally already bf16
        x = x.astype(jnp.bfloat16)
    acc_ref[...] += jax.lax.dot_general(
        x, w_ref[...], (((1,), (0,)), ((), ())),
        preferred_element_type=jnp.float32)

    @pl.when(pl.program_id(2) == pl.num_programs(2) - 1)
    def _():
        y = acc_ref[...] + b_ref[...]
        if activation == "gelu":
            y = _gelu(y)
        elif activation == "tanh":
            y = jnp.tanh(y)
        if has_residual:
            y = y + r_ref[...].astype(jnp.float32)
        if has_ln:
            y = _ln(y, g_ref[...], beta_ref[...], ln_eps)
        o_ref[...] = y.astype(o_ref.dtype)


def _attn_kernel(qkv_ref, m_ref, o_ref, *, num_heads, head_dim, scale):
    """All heads of one batch element: softmax(q k^T * scale + mask) v.

    qkv_ref: (1, S, 3H) bf16 (heads sliced from the value -> no host transposes),
    single full-width (S, H) lane-dense store.
    """
    qkv = qkv_ref[0]                                   # (S, 3H) bf16
    bias = (1.0 - m_ref[0]) * -10000.0                 # (1, S) BERT additive mask
    hid = num_heads * head_dim
    ctx = []
    for h in range(num_heads):
        qh = qkv[:, h * head_dim:(h + 1) * head_dim] * scale            # bf16
        kh = qkv[:, hid + h * head_dim: hid + (h + 1) * head_dim]
        vh = qkv[:, 2 * hid + h * head_dim: 2 * hid + (h + 1) * head_dim]
        s = jax.lax.dot_general(qh, kh, (((1,), (1,)), ((), ())),
                                preferred_element_type=jnp.float32)     # (S, S) f32
        s = s + bias
        s_max = jnp.max(s, axis=-1, keepdims=True)
        e = jnp.exp(s - s_max)
        p = e * _recip(jnp.sum(e, axis=-1, keepdims=True))
        ctx.append(jnp.dot(p.astype(jnp.bfloat16), vh,
                           preferred_element_type=jnp.float32))          # (S, hd) f32
    o_ref[0] = jnp.concatenate(ctx, axis=-1).astype(o_ref.dtype)         # (S, H)


def _embeddings_kernel(wid_ref,                     # SMEM (flat,) int32 word ids (prefetch)
                       wtbl_ref,                    # HBM (pl.ANY) word table
                       pos_ref,                     # VMEM (tm, H) position rows (BlockSpec)
                       ttbl_ref,                    # VMEM (type_vocab, H) full type table
                       tt_ref,                      # VMEM (tm, 1) int32 token-type ids
                       g_ref, b_ref,                # VMEM (1, H) LN params
                       o_ref,                       # VMEM (tm, H) bf16 out
                       buf, sem, *, tm, type_vocab, eps):
    """Word-embedding DMA gather + pos/type add + LayerNorm, tm tokens per step."""
    base = pl.program_id(0) * tm
    for t in range(tm):                              # issue all word-row gathers
        pltpu.make_async_copy(wtbl_ref.at[wid_ref[base + t]], buf.at[t],
                              sem.at[t]).start()
    for t in range(tm):                              # wait for all gathers
        pltpu.make_async_copy(wtbl_ref.at[0], buf.at[t], sem.at[t]).wait()

    # token-type embedding via vectorized selects over the tiny (type_vocab, H) table.
    tt = tt_ref[...]                                 # (tm, 1) int32
    typ = jnp.zeros((tm, ttbl_ref.shape[1]), jnp.float32)
    for k in range(type_vocab):
        typ = typ + jnp.where(tt == k, 1.0, 0.0) * ttbl_ref[k][None, :]

    x = buf[...] + pos_ref[...] + typ                # (tm, H) f32
    o_ref[...] = _ln(x, g_ref[...], b_ref[...], eps).astype(o_ref.dtype)


def _entity_encoder_kernel(ids_ref, len_ref,         # SMEM prefetch
                           tbl_ref,                  # HBM (pl.ANY) entity table
                           g1_ref, b1_ref, w1_ref, bb1_ref,
                           w2_ref, bb2_ref, g2_ref, b2_ref,
                           o_ref, buf, sem, *, elen, eps):
    """One batch row: gather -> LN1 -> fc1 GELU -> fc2 -> masked max pool -> LN2."""
    b = pl.program_id(0)
    for e in range(elen):
        pltpu.make_async_copy(tbl_ref.at[ids_ref[b * elen + e]], buf.at[e],
                              sem.at[e]).start()
    for e in range(elen):
        pltpu.make_async_copy(tbl_ref.at[0], buf.at[e], sem.at[e]).wait()

    x = _ln(buf[...], g1_ref[...], b1_ref[...], eps)                     # ln1 (dropout=id)
    h = jnp.dot(x.astype(jnp.bfloat16), w1_ref[...],
                preferred_element_type=jnp.float32) + bb1_ref[...]
    h = _gelu(h)
    h = jnp.dot(h.astype(jnp.bfloat16), w2_ref[...],
                preferred_element_type=jnp.float32) + bb2_ref[...]       # (elen, h2) f32

    # single_pool: max over the first `length` entities (length clamped >= 1),
    # vectorized mask + one reduce, kept in f32 (bf16 could not hold the fill value).
    length = jnp.maximum(len_ref[b], 1)
    pos = jax.lax.broadcasted_iota(jnp.int32, (elen, 1), 0)
    pooled = jnp.max(jnp.where(pos < length, h, jnp.finfo(jnp.float32).min),
                     axis=0, keepdims=True)                              # (1, h2)
    o_ref[0] = _ln(pooled, g2_ref[...], b2_ref[...], eps).astype(o_ref.dtype)


# --------------------------- pallas_call wrappers -----------------------------

def _pick_tile(dim, target):
    """Largest MXU-friendly tile that divides `dim` (falls back to the full dim)."""
    if dim <= target:
        return dim
    for t in range(target, 0, -128):
        if dim % t == 0:
            return t
    return dim


def dense(x, w_t, b, activation="none", residual=None, ln=None,
          out_dtype=jnp.bfloat16, tm_target=256, tn_target=256, tk_target=512):
    """y = act(x @ w_t + b) [+ residual] [-> LayerNorm].  w_t is [K, N] bf16."""
    m, kdim = x.shape
    k2, n = w_t.shape
    assert kdim == k2
    tm = _pick_tile(m, tm_target)
    tk = _pick_tile(kdim, tk_target)
    # TODO(synk): LN epilogue needs the full feature dim in one tile (fine up to ~4K).
    tn = n if ln is not None else _pick_tile(n, tn_target)
    grid = (m // tm, n // tn, kdim // tk)

    # 3-deep weight streaming only helps (and only costs VMEM) on long K grids.
    w_map = lambda i, j, k: (k, j)
    if kdim // tk >= 3:
        w_spec = pl.BlockSpec((tk, tn), w_map, pipeline_mode=pl.Buffered(3))
    else:
        w_spec = pl.BlockSpec((tk, tn), w_map)

    in_specs = [
        pl.BlockSpec((tm, tk), lambda i, j, k: (i, k)),
        w_spec,
        pl.BlockSpec((1, tn), lambda i, j, k: (0, j)),
    ]
    args = [x, w_t, b.reshape(1, n)]
    if residual is not None:
        in_specs.append(pl.BlockSpec((tm, tn), lambda i, j, k: (i, j)))
        args.append(residual)
    if ln is not None:
        g, beta = ln
        in_specs.append(pl.BlockSpec((1, tn), lambda i, j, k: (0, j)))
        in_specs.append(pl.BlockSpec((1, tn), lambda i, j, k: (0, j)))
        args.extend([g.reshape(1, n), beta.reshape(1, n)])

    kernel = functools.partial(_dense_kernel, activation=activation,
                               has_residual=residual is not None,
                               has_ln=ln is not None, ln_eps=LN_EPS)
    return pl.pallas_call(
        kernel,
        grid_spec=pltpu.PrefetchScalarGridSpec(
            num_scalar_prefetch=0,
            grid=grid,
            in_specs=in_specs,
            out_specs=pl.BlockSpec((tm, tn), lambda i, j, k: (i, j)),
            scratch_shapes=[pltpu.VMEM((tm, tn), jnp.float32)],
        ),
        out_shape=jax.ShapeDtypeStruct((m, n), out_dtype),
        compiler_params=pltpu.CompilerParams(
            dimension_semantics=("parallel", "parallel", "arbitrary"),
            # 32 MiB: plenty for the <=3 MiB tile footprint, leaves headroom on
            # v7x's 64 MiB VMEM and is well under v5e/v6e limits.
            vmem_limit_bytes=32 * _MIB),
    )(*args)


def multi_head_attention(qkv, attention_mask, num_heads):
    """qkv: (B, S, 3H) fused projection output (bf16) -> (B, S, H) bf16 context."""
    b, s, h3 = qkv.shape
    h = h3 // 3
    hd = h // num_heads
    assert num_heads * hd == h
    mask3 = attention_mask.reshape(b, 1, s).astype(jnp.float32)

    return pl.pallas_call(
        functools.partial(_attn_kernel, num_heads=num_heads, head_dim=hd,
                          scale=1.0 / math.sqrt(hd)),
        grid=(b,),
        in_specs=[
            pl.BlockSpec((1, s, h3), lambda bi: (bi, 0, 0)),   # fused qkv, no transpose
            pl.BlockSpec((1, 1, s), lambda bi: (bi, 0, 0)),
        ],
        out_specs=pl.BlockSpec((1, s, h), lambda bi: (bi, 0, 0)),
        out_shape=jax.ShapeDtypeStruct((b, s, h), jnp.bfloat16),
        compiler_params=pltpu.CompilerParams(
            dimension_semantics=("parallel",)),
    )(qkv, mask3)


def bert_embeddings(input_ids, token_type_ids, word_emb, pos_emb, type_emb,
                    g, b, tm_target=128):
    """Fused word gather + pos/type add + LayerNorm -> (flat, H) bf16."""
    bsz, seq = input_ids.shape
    hid = word_emb.shape[1]
    type_vocab = type_emb.shape[0]
    flat = bsz * seq
    # tile divides seq so a token block's positions are contiguous (regular BlockSpec);
    # prefer a multiple-of-8 sublane tile.
    tm = min(seq, tm_target)
    while seq % tm or (tm % 8 and tm != seq):
        tm -= 1
    blocks_per_seq = seq // tm

    wids = input_ids.reshape(flat).astype(jnp.int32)
    tt = token_type_ids.reshape(flat, 1).astype(jnp.int32)

    return pl.pallas_call(
        functools.partial(_embeddings_kernel, tm=tm, type_vocab=type_vocab,
                          eps=LN_EPS),
        grid_spec=pltpu.PrefetchScalarGridSpec(
            num_scalar_prefetch=1,
            grid=(flat // tm,),
            in_specs=[
                pl.BlockSpec(memory_space=pl.ANY),                       # word table (HBM)
                pl.BlockSpec((tm, hid),
                             lambda i, wid: (i % blocks_per_seq, 0)),    # position rows
                pl.BlockSpec((type_vocab, hid), lambda i, wid: (0, 0)),  # type table
                pl.BlockSpec((tm, 1), lambda i, wid: (i, 0)),            # token-type ids
                pl.BlockSpec((1, hid), lambda i, wid: (0, 0)),           # LN gamma
                pl.BlockSpec((1, hid), lambda i, wid: (0, 0)),           # LN beta
            ],
            out_specs=pl.BlockSpec((tm, hid), lambda i, wid: (i, 0)),
            scratch_shapes=[
                pltpu.VMEM((tm, hid), jnp.float32),
                pltpu.SemaphoreType.DMA((tm,)),
            ],
        ),
        out_shape=jax.ShapeDtypeStruct((flat, hid), jnp.bfloat16),
        compiler_params=pltpu.CompilerParams(dimension_semantics=("parallel",)),
    )(wids, word_emb, pos_emb, type_emb, tt, g.reshape(1, hid), b.reshape(1, hid))


def entity_encoder(p, entity_ids, entity_length):
    """Fully fused EntityEncoder forward -> (B, en_h2) bf16."""
    bsz, elen = entity_ids.shape
    en_dim, h1 = p["en_fc1_w"].shape
    h2 = p["en_fc2_w"].shape[1]
    ids = entity_ids.reshape(bsz * elen).astype(jnp.int32)
    lens = entity_length.astype(jnp.int32)

    kernel = functools.partial(_entity_encoder_kernel, elen=elen, eps=LN_EPS)
    out = pl.pallas_call(
        kernel,
        grid_spec=pltpu.PrefetchScalarGridSpec(
            num_scalar_prefetch=2,
            grid=(bsz,),
            in_specs=[
                pl.BlockSpec(memory_space=pl.ANY),                          # entity table
                pl.BlockSpec((1, en_dim), lambda i, ids, lens: (0, 0)),     # ln1 g
                pl.BlockSpec((1, en_dim), lambda i, ids, lens: (0, 0)),     # ln1 b
                pl.BlockSpec((en_dim, h1), lambda i, ids, lens: (0, 0)),    # fc1 w
                pl.BlockSpec((1, h1), lambda i, ids, lens: (0, 0)),         # fc1 b
                pl.BlockSpec((h1, h2), lambda i, ids, lens: (0, 0)),        # fc2 w
                pl.BlockSpec((1, h2), lambda i, ids, lens: (0, 0)),         # fc2 b
                pl.BlockSpec((1, h2), lambda i, ids, lens: (0, 0)),         # ln2 g
                pl.BlockSpec((1, h2), lambda i, ids, lens: (0, 0)),         # ln2 b
            ],
            out_specs=pl.BlockSpec((1, 1, h2), lambda i, ids, lens: (i, 0, 0)),
            scratch_shapes=[
                pltpu.VMEM((elen, en_dim), jnp.float32),
                pltpu.SemaphoreType.DMA((elen,)),
            ],
        ),
        out_shape=jax.ShapeDtypeStruct((bsz, 1, h2), jnp.bfloat16),
        compiler_params=pltpu.CompilerParams(dimension_semantics=("parallel",)),
    )(ids, lens, p["en_emb"],
      p["en_ln1_g"].reshape(1, en_dim), p["en_ln1_b"].reshape(1, en_dim),
      p["en_fc1_w"], p["en_fc1_b"].reshape(1, h1),
      p["en_fc2_w"], p["en_fc2_b"].reshape(1, h2),
      p["en_ln2_g"].reshape(1, h2), p["en_ln2_b"].reshape(1, h2))
    return out.reshape(bsz, h2)


# ------------------------------- model forward --------------------------------

def bert_encoder(p, input_ids, token_type_ids, attention_mask, cfg):
    """Embeddings + transformer layers; returns sequence output (B, S, H) bf16."""
    bsz, seq = input_ids.shape
    hid = cfg["hidden"]
    flat = bsz * seq

    x = bert_embeddings(input_ids, token_type_ids, p["word_emb"], p["pos_emb"],
                        p["type_emb"], p["emb_ln_g"], p["emb_ln_b"])
    # embedding dropout: identity (eval)

    for lyr in p["layers"]:
        qkv = dense(x, lyr["qkv_w"], lyr["qkv_b"])                        # fused Q/K/V
        ctx = multi_head_attention(qkv.reshape(bsz, seq, 3 * hid),
                                   attention_mask, cfg["heads"])
        x = dense(ctx.reshape(flat, hid), lyr["o_w"], lyr["o_b"],
                  residual=x, ln=(lyr["ln1_g"], lyr["ln1_b"]))            # out+add+LN1
        h = dense(x, lyr["i_w"], lyr["i_b"], activation="gelu")           # FFN in+GELU
        x = dense(h, lyr["out_w"], lyr["out_b"],
                  residual=x, ln=(lyr["ln2_g"], lyr["ln2_b"]))            # FFN out+add+LN2
    return x.reshape(bsz, seq, hid)


def model_forward(p, input_ids, token_type_ids, attention_mask,
                  entity_ids, entity_length, cfg):
    seq_out = bert_encoder(p, input_ids, token_type_ids, attention_mask, cfg)
    cls = seq_out[:, 0, :]
    # BERT pooler (dense+tanh) fused with Model.ln
    bert_out = dense(cls, p["pooler_w"], p["pooler_b"], activation="tanh",
                     ln=(p["ln_g"], p["ln_b"]))
    en_out = entity_encoder(p, entity_ids, entity_length)                 # use_en_encoder=True
    x = jnp.concatenate([bert_out, en_out], axis=1)                       # (B, H+h2) bf16
    # dropout: identity (eval)
    y_pred = dense(x, p["fc_w"], p["fc_b"], out_dtype=jnp.float32)        # (B, output_size)
    return jnp.squeeze(y_pred, axis=-1)                                   # labels=None branch


# ------------------------------ parameter init --------------------------------

def init_params(key, cfg):
    keys = iter(jax.random.split(key, 128))

    def nrm(shape):
        return jax.random.normal(next(keys), shape, jnp.float32) * 0.02

    def zeros(shape):
        return jnp.zeros(shape, jnp.float32)

    def ones(shape):
        return jnp.ones(shape, jnp.float32)

    def lin(n_out, n_in):
        # PyTorch nn.Linear weight is [out, in]; pre-transpose to [in, out] (natural
        # MXU RHS layout) and cast to bf16 once, host-side.  Bias stays f32.
        w = nrm((n_out, n_in))
        return jnp.asarray(w.T, jnp.bfloat16), zeros((n_out,))

    H, I = cfg["hidden"], cfg["inter"]
    pooler_w, pooler_b = lin(H, H)
    fc_w, fc_b = lin(cfg["out"], H + cfg["en_h2"])
    en_fc1_w, en_fc1_b = lin(cfg["en_h1"], cfg["en_dim"])
    en_fc2_w, en_fc2_b = lin(cfg["en_h2"], cfg["en_h1"])

    params = dict(
        word_emb=nrm((cfg["vocab"], H)),
        pos_emb=nrm((cfg["max_pos"], H)),
        type_emb=nrm((cfg["type_vocab"], H)),
        emb_ln_g=ones((H,)), emb_ln_b=zeros((H,)),
        layers=[],
        pooler_w=pooler_w, pooler_b=pooler_b,
        ln_g=ones((H,)), ln_b=zeros((H,)),
        en_emb=nrm((cfg["en_vocab"], cfg["en_dim"])),
        en_ln1_g=ones((cfg["en_dim"],)), en_ln1_b=zeros((cfg["en_dim"],)),
        en_fc1_w=en_fc1_w, en_fc1_b=en_fc1_b,
        en_fc2_w=en_fc2_w, en_fc2_b=en_fc2_b,
        en_ln2_g=ones((cfg["en_h2"],)), en_ln2_b=zeros((cfg["en_h2"],)),
        fc_w=fc_w, fc_b=fc_b,
    )
    for _ in range(cfg["layers"]):
        qw, qb = lin(H, H)
        kw, kb = lin(H, H)
        vw, vb = lin(H, H)
        ow, ob = lin(H, H)
        iw, ib = lin(I, H)
        outw, outb = lin(H, I)
        params["layers"].append(dict(
            qkv_w=jnp.concatenate([qw, kw, vw], axis=1),   # (H, 3H) bf16, fused QKV
            qkv_b=jnp.concatenate([qb, kb, vb], axis=0),   # (3H,) f32
            o_w=ow, o_b=ob,
            ln1_g=ones((H,)), ln1_b=zeros((H,)),
            i_w=iw, i_b=ib,
            out_w=outw, out_b=outb,
            ln2_g=ones((H,)), ln2_b=zeros((H,)),
        ))
    return params


# ----------------------------------- main --------------------------------------

if __name__ == "__main__":
    cfg = dict(
        vocab=100, hidden=32, layers=2, heads=2, inter=64, max_pos=16,
        type_vocab=2, en_vocab=50, en_dim=16, en_h1=32, en_h2=16, out=1,
        batch=2, seq=8, en_len=4,
    )
    key = jax.random.PRNGKey(0)
    pkey, dkey = jax.random.split(key)
    params = init_params(pkey, cfg)

    k1, k2 = jax.random.split(dkey)
    input_ids = jax.random.randint(k1, (cfg["batch"], cfg["seq"]), 0, cfg["vocab"], jnp.int32)
    token_type_ids = jnp.zeros((cfg["batch"], cfg["seq"]), jnp.int32)
    attention_mask = jnp.ones((cfg["batch"], cfg["seq"]), jnp.int32)
    entity_ids = jax.random.randint(k2, (cfg["batch"], cfg["en_len"]), 0, cfg["en_vocab"], jnp.int32)
    entity_length = jnp.array([3, 0], jnp.int32)   # zero-length row exercises the clamp

    y_pred = model_forward(params, input_ids, token_type_ids, attention_mask,
                           entity_ids, entity_length, cfg)
    jax.block_until_ready(y_pred)
    assert y_pred.shape == (cfg["batch"],)
    assert bool(jnp.all(jnp.isfinite(y_pred)))
    print("KERNEL_OK")
</pallas_src>

<mosaic_0001>
module attributes {stable_mosaic.version = 11 : i64} {
  func.func @_embeddings_kernel(%arg0: i32, %arg1: memref<16xi32, #tpu.memory_space<smem>>, %arg2: memref<100x32xf32, #tpu.memory_space<any>>, %arg3: memref<8x32xf32, #tpu.memory_space<vmem>>, %arg4: memref<2x32xf32, #tpu.memory_space<vmem>>, %arg5: memref<8x1xi32, #tpu.memory_space<vmem>>, %arg6: memref<1x32xf32, #tpu.memory_space<vmem>>, %arg7: memref<1x32xf32, #tpu.memory_space<vmem>>, %arg8: memref<8x32xbf16, #tpu.memory_space<vmem>>, %arg9: memref<8x32xf32, #tpu.memory_space<vmem>>, %arg10: memref<8x!tpu.dma_semaphore, #tpu.memory_space<semaphore_mem>>) attributes {dimension_semantics = [#tpu.dimension_semantics<parallel>], iteration_bounds = array<i64: 2>, scalar_prefetch = 1 : i64, scratch_operands = 2 : i64, tpu.core_type = #tpu.core_type<tc>, window_params = [{}, {transform_indices = @transform_1, window_bounds = array<i64: 8, 32>}, {pipeline_mode = #tpu.pipeline_mode<synchronous>, transform_indices = @transform_2, window_bounds = array<i64: 2, 32>}, {transform_indices = @transform_3, window_bounds = array<i64: 8, 1>}, {pipeline_mode = #tpu.pipeline_mode<synchronous>, transform_indices = @transform_4, window_bounds = array<i64: 1, 32>}, {pipeline_mode = #tpu.pipeline_mode<synchronous>, transform_indices = @transform_5, window_bounds = array<i64: 1, 32>}, {transform_indices = @transform_6, window_bounds = array<i64: 8, 32>}]} {
    %c8_i32 = arith.constant 8 : i32
    %0 = arith.muli %arg0, %c8_i32 : i32
    %c0_i32 = arith.constant 0 : i32
    %1 = arith.addi %0, %c0_i32 : i32
    %2 = arith.index_cast %1 : i32 to index
    %3 = memref.load %arg1[%2] : memref<16xi32, #tpu.memory_space<smem>>
    %c0_i32_0 = arith.constant 0 : i32
    %c0_i32_1 = arith.constant 0 : i32
    %c0_i32_2 = arith.constant 0 : i32
    %4 = tpu.memref_slice %arg2[%3, %c0_i32_2] : memref<100x32xf32, #tpu.memory_space<any>> -> memref<1x32xf32, #tpu.memory_space<any>>
    %5 = tpu.memref_squeeze %4 : memref<1x32xf32, #tpu.memory_space<any>> -> memref<32xf32, #tpu.memory_space<any>>
    %c0_i32_3 = arith.constant 0 : i32
    %6 = tpu.memref_slice %arg9[%c0_i32_0, %c0_i32_3] : memref<8x32xf32, #tpu.memory_space<vmem>> -> memref<1x32xf32, #tpu.memory_space<vmem>>
    %7 = tpu.memref_squeeze %6 : memref<1x32xf32, #tpu.memory_space<vmem>> -> memref<32xf32, #tpu.memory_space<vmem>>
    %8 = tpu.memref_slice %arg10[%c0_i32_1] : memref<8x!tpu.dma_semaphore, #tpu.memory_space<semaphore_mem>> -> memref<1x!tpu.dma_semaphore, #tpu.memory_space<semaphore_mem>>
    %9 = tpu.memref_squeeze %8 : memref<1x!tpu.dma_semaphore, #tpu.memory_space<semaphore_mem>> -> memref<!tpu.dma_semaphore, #tpu.memory_space<semaphore_mem>>
    tpu.enqueue_dma source(%5 : memref<32xf32, #tpu.memory_space<any>>) target(%7 : memref<32xf32, #tpu.memory_space<vmem>>) target_semaphore(%9 : memref<!tpu.dma_semaphore, #tpu.memory_space<semaphore_mem>>)
    %c1_i32 = arith.constant 1 : i32
    %10 = arith.addi %0, %c1_i32 : i32
    %11 = arith.index_cast %10 : i32 to index
    %12 = memref.load %arg1[%11] : memref<16xi32, #tpu.memory_space<smem>>
    %c1_i32_4 = arith.constant 1 : i32
    %c1_i32_5 = arith.constant 1 : i32
    %c0_i32_6 = arith.constant 0 : i32
    %13 = tpu.memref_slice %arg2[%12, %c0_i32_6] : memref<100x32xf32, #tpu.memory_space<any>> -> memref<1x32xf32, #tpu.memory_space<any>>
    %14 = tpu.memref_squeeze %13 : memref<1x32xf32, #tpu.memory_space<any>> -> memref<32xf32, #tpu.memory_space<any>>
    %c0_i32_7 = arith.constant 0 : i32
    %15 = tpu.memref_slice %arg9[%c1_i32_4, %c0_i32_7] : memref<8x32xf32, #tpu.memory_space<vmem>> -> memref<1x32xf32, #tpu.memory_space<vmem>>
    %16 = tpu.memref_squeeze %15 : memref<1x32xf32, #tpu.memory_space<vmem>> -> memref<32xf32, #tpu.memory_space<vmem>>
    %17 = tpu.memref_slice %arg10[%c1_i32_5] : memref<8x!tpu.dma_semaphore, #tpu.memory_space<semaphore_mem>> -> memref<1x!tpu.dma_semaphore, #tpu.memory_space<semaphore_mem>>
    %18 = tpu.memref_squeeze %17 : memref<1x!tpu.dma_semaphore, #tpu.memory_space<semaphore_mem>> -> memref<!tpu.dma_semaphore, #tpu.memory_space<semaphore_mem>>
    tpu.enqueue_dma source(%14 : memref<32xf32, #tpu.memory_space<any>>) target(%16 : memref<32xf32, #tpu.memory_space<vmem>>) target_semaphore(%18 : memref<!tpu.dma_semaphore, #tpu.memory_space<semaphore_mem>>)
    %c2_i32 = arith.constant 2 : i32
    %19 = arith.addi %0, %c2_i32 : i32
    %20 = arith.index_cast %19 : i32 to index
    %21 = memref.load %arg1[%20] : memref<16xi32, #tpu.memory_space<smem>>
    %c2_i32_8 = arith.constant 2 : i32
    %c2_i32_9 = arith.constant 2 : i32
    %c0_i32_10 = arith.constant 0 : i32
    %22 = tpu.memref_slice %arg2[%21, %c0_i32_10] : memref<100x32xf32, #tpu.memory_space<any>> -> memref<1x32xf32, #tpu.memory_space<any>>
    %23 = tpu.memref_squeeze %22 : memref<1x32xf32, #tpu.memory_space<any>> -> memref<32xf32, #tpu.memory_space<any>>
    %c0_i32_11 = arith.constant 0 : i32
    %24 = tpu.memref_slice %arg9[%c2_i32_8, %c0_i32_11] : memref<8x32xf32, #tpu.memory_space<vmem>> -> memref<1x32xf32, #tpu.memory_space<vmem>>
    %25 = tpu.memref_squeeze %24 : memref<1x32xf32, #tpu.memory_space<vmem>> -> memref<32xf32, #tpu.memory_space<vmem>>
    %26 = tpu.memref_slice %arg10[%c2_i32_9] : memref<8x!tpu.dma_semaphore, #tpu.memory_space<semaphore_mem>> -> memref<1x!tpu.dma_semaphore, #tpu.memory_space<semaphore_mem>>
    %27 = tpu.memref_squeeze %26 : memref<1x!tpu.dma_semaphore, #tpu.memory_space<semaphore_mem>> -> memref<!tpu.dma_semaphore, #tpu.memory_space<semaphore_mem>>
    tpu.enqueue_dma source(%23 : memref<32xf32, #tpu.memory_space<any>>) target(%25 : memref<32xf32, #tpu.memory_space<vmem>>) target_semaphore(%27 : memref<!tpu.dma_semaphore, #tpu.memory_space<semaphore_mem>>)
    %c3_i32 = arith.constant 3 : i32
    %28 = arith.addi %0, %c3_i32 : i32
    %29 = arith.index_cast %28 : i32 to index
    %30 = memref.load %arg1[%29] : memref<16xi32, #tpu.memory_space<smem>>
    %c3_i32_12 = arith.constant 3 : i32
    %c3_i32_13 = arith.constant 3 : i32
    %c0_i32_14 = arith.constant 0 : i32
    %31 = tpu.memref_slice %arg2[%30, %c0_i32_14] : memref<100x32xf32, #tpu.memory_space<any>> -> memref<1x32xf32, #tpu.memory_space<any>>
    %32 = tpu.memref_squeeze %31 : memref<1x32xf32, #tpu.memory_space<any>> -> memref<32xf32, #tpu.memory_space<any>>
    %c0_i32_15 = arith.constant 0 : i32
    %33 = tpu.memref_slice %arg9[%c3_i32_12, %c0_i32_15] : memref<8x32xf32, #tpu.memory_space<vmem>> -> memref<1x32xf32, #tpu.memory_space<vmem>>
    %34 = tpu.memref_squeeze %33 : memref<1x32xf32, #tpu.memory_space<vmem>> -> memref<32xf32, #tpu.memory_space<vmem>>
    %35 = tpu.memref_slice %arg10[%c3_i32_13] : memref<8x!tpu.dma_semaphore, #tpu.memory_space<semaphore_mem>> -> memref<1x!tpu.dma_semaphore, #tpu.memory_space<semaphore_mem>>
    %36 = tpu.memref_squeeze %35 : memref<1x!tpu.dma_semaphore, #tpu.memory_space<semaphore_mem>> -> memref<!tpu.dma_semaphore, #tpu.memory_space<semaphore_mem>>
    tpu.enqueue_dma source(%32 : memref<32xf32, #tpu.memory_space<any>>) target(%34 : memref<32xf32, #tpu.memory_space<vmem>>) target_semaphore(%36 : memref<!tpu.dma_semaphore, #tpu.memory_space<semaphore_mem>>)
    %c4_i32 = arith.constant 4 : i32
    %37 = arith.addi %0, %c4_i32 : i32
    %38 = arith.index_cast %37 : i32 to index
    %39 = memref.load %arg1[%38] : memref<16xi32, #tpu.memory_space<smem>>
    %c4_i32_16 = arith.constant 4 : i32
    %c4_i32_17 = arith.constant 4 : i32
    %c0_i32_18 = arith.constant 0 : i32
    %40 = tpu.memref_slice %arg2[%39, %c0_i32_18] : memref<100x32xf32, #tpu.memory_space<any>> -> memref<1x32xf32, #tpu.memory_space<any>>
    %41 = tpu.memref_squeeze %40 : memref<1x32xf32, #tpu.memory_space<any>> -> memref<32xf32, #tpu.memory_space<any>>
    %c0_i32_19 = arith.constant 0 : i32
    %42 = tpu.memref_slice %arg9[%c4_i32_16, %c0_i32_19] : memref<8x32xf32, #tpu.memory_space<vmem>> -> memref<1x32xf32, #tpu.memory_space<vmem>>
    %43 = tpu.memref_squeeze %42 : memref<1x32xf32, #tpu.memory_space<vmem>> -> memref<32xf32, #tpu.memory_space<vmem>>
    %44 = tpu.memref_slice %arg10[%c4_i32_17] : memref<8x!tpu.dma_semaphore, #tpu.memory_space<semaphore_mem>> -> memref<1x!tpu.dma_semaphore, #tpu.memory_space<semaphore_mem>>
    %45 = tpu.memref_squeeze %44 : memref<1x!tpu.dma_semaphore, #tpu.memory_space<semaphore_mem>> -> memref<!tpu.dma_semaphore, #tpu.memory_space<semaphore_mem>>
    tpu.enqueue_dma source(%41 : memref<32xf32, #tpu.memory_space<any>>) target(%43 : memref<32xf32, #tpu.memory_space<vmem>>) target_semaphore(%45 : memref<!tpu.dma_semaphore, #tpu.memory_space<semaphore_mem>>)
    %c5_i32 = arith.constant 5 : i32
    %46 = arith.addi %0, %c5_i32 : i32
    %47 = arith.index_cast %46 : i32 to index
    %48 = memref.load %arg1[%47] : memref<16xi32, #tpu.memory_space<smem>>
    %c5_i32_20 = arith.constant 5 : i32
    %c5_i32_21 = arith.constant 5 : i32
    %c0_i32_22 = arith.constant 0 : i32
    %49 = tpu.memref_slice %arg2[%48, %c0_i32_22] : memref<100x32xf32, #tpu.memory_space<any>> -> memref<1x32xf32, #tpu.memory_space<any>>
    %50 = tpu.memref_squeeze %49 : memref<1x32xf32, #tpu.memory_space<any>> -> memref<32xf32, #tpu.memory_space<any>>
    %c0_i32_23 = arith.constant 0 : i32
    %51 = tpu.memref_slice %arg9[%c5_i32_20, %c0_i32_23] : memref<8x32xf32, #tpu.memory_space<vmem>> -> memref<1x32xf32, #tpu.memory_space<vmem>>
    %52 = tpu.memref_squeeze %51 : memref<1x32xf32, #tpu.memory_space<vmem>> -> memref<32xf32, #tpu.memory_space<vmem>>
    %53 = tpu.memref_slice %arg10[%c5_i32_21] : memref<8x!tpu.dma_semaphore, #tpu.memory_space<semaphore_mem>> -> memref<1x!tpu.dma_semaphore, #tpu.memory_space<semaphore_mem>>
    %54 = tpu.memref_squeeze %53 : memref<1x!tpu.dma_semaphore, #tpu.memory_space<semaphore_mem>> -> memref<!tpu.dma_semaphore, #tpu.memory_space<semaphore_mem>>
    tpu.enqueue_dma source(%50 : memref<32xf32, #tpu.memory_space<any>>) target(%52 : memref<32xf32, #tpu.memory_space<vmem>>) target_semaphore(%54 : memref<!tpu.dma_semaphore, #tpu.memory_space<semaphore_mem>>)
    %c6_i32 = arith.constant 6 : i32
    %55 = arith.addi %0, %c6_i32 : i32
    %56 = arith.index_cast %55 : i32 to index
    %57 = memref.load %arg1[%56] : memref<16xi32, #tpu.memory_space<smem>>
    %c6_i32_24 = arith.constant 6 : i32
    %c6_i32_25 = arith.constant 6 : i32
    %c0_i32_26 = arith.constant 0 : i32
    %58 = tpu.memref_slice %arg2[%57, %c0_i32_26] : memref<100x32xf32, #tpu.memory_space<any>> -> memref<1x32xf32, #tpu.memory_space<any>>
    %59 = tpu.memref_squeeze %58 : memref<1x32xf32, #tpu.memory_space<any>> -> memref<32xf32, #tpu.memory_space<any>>
    %c0_i32_27 = arith.constant 0 : i32
    %60 = tpu.memref_slice %arg9[%c6_i32_24, %c0_i32_27] : memref<8x32xf32, #tpu.memory_space<vmem>> -> memref<1x32xf32, #tpu.memory_space<vmem>>
    %61 = tpu.memref_squeeze %60 : memref<1x32xf32, #tpu.memory_space<vmem>> -> memref<32xf32, #tpu.memory_space<vmem>>
    %62 = tpu.memref_slice %arg10[%c6_i32_25] : memref<8x!tpu.dma_semaphore, #tpu.memory_space<semaphore_mem>> -> memref<1x!tpu.dma_semaphore, #tpu.memory_space<semaphore_mem>>
    %63 = tpu.memref_squeeze %62 : memref<1x!tpu.dma_semaphore, #tpu.memory_space<semaphore_mem>> -> memref<!tpu.dma_semaphore, #tpu.memory_space<semaphore_mem>>
    tpu.enqueue_dma source(%59 : memref<32xf32, #tpu.memory_space<any>>) target(%61 : memref<32xf32, #tpu.memory_space<vmem>>) target_semaphore(%63 : memref<!tpu.dma_semaphore, #tpu.memory_space<semaphore_mem>>)
    %c7_i32 = arith.constant 7 : i32
    %64 = arith.addi %0, %c7_i32 : i32
    %65 = arith.index_cast %64 : i32 to index
    %66 = memref.load %arg1[%65] : memref<16xi32, #tpu.memory_space<smem>>
    %c7_i32_28 = arith.constant 7 : i32
    %c7_i32_29 = arith.constant 7 : i32
    %c0_i32_30 = arith.constant 0 : i32
    %67 = tpu.memref_slice %arg2[%66, %c0_i32_30] : memref<100x32xf32, #tpu.memory_space<any>> -> memref<1x32xf32, #tpu.memory_space<any>>
    %68 = tpu.memref_squeeze %67 : memref<1x32xf32, #tpu.memory_space<any>> -> memref<32xf32, #tpu.memory_space<any>>
    %c0_i32_31 = arith.constant 0 : i32
    %69 = tpu.memref_slice %arg9[%c7_i32_28, %c0_i32_31] : memref<8x32xf32, #tpu.memory_space<vmem>> -> memref<1x32xf32, #tpu.memory_space<vmem>>
    %70 = tpu.memref_squeeze %69 : memref<1x32xf32, #tpu.memory_space<vmem>> -> memref<32xf32, #tpu.memory_space<vmem>>
    %71 = tpu.memref_slice %arg10[%c7_i32_29] : memref<8x!tpu.dma_semaphore, #tpu.memory_space<semaphore_mem>> -> memref<1x!tpu.dma_semaphore, #tpu.memory_space<semaphore_mem>>
    %72 = tpu.memref_squeeze %71 : memref<1x!tpu.dma_semaphore, #tpu.memory_space<semaphore_mem>> -> memref<!tpu.dma_semaphore, #tpu.memory_space<semaphore_mem>>
    tpu.enqueue_dma source(%68 : memref<32xf32, #tpu.memory_space<any>>) target(%70 : memref<32xf32, #tpu.memory_space<vmem>>) target_semaphore(%72 : memref<!tpu.dma_semaphore, #tpu.memory_space<semaphore_mem>>)
    %c0_i32_32 = arith.constant 0 : i32
    %c0_i32_33 = arith.constant 0 : i32
    %c0_i32_34 = arith.constant 0 : i32
    %c0_i32_35 = arith.constant 0 : i32
    %73 = tpu.memref_slice %arg2[%c0_i32_32, %c0_i32_35] : memref<100x32xf32, #tpu.memory_space<any>> -> memref<1x32xf32, #tpu.memory_space<any>>
    %74 = tpu.memref_squeeze %73 : memref<1x32xf32, #tpu.memory_space<any>> -> memref<32xf32, #tpu.memory_space<any>>
    %c0_i32_36 = arith.constant 0 : i32
    %75 = tpu.memref_slice %arg9[%c0_i32_33, %c0_i32_36] : memref<8x32xf32, #tpu.memory_space<vmem>> -> memref<1x32xf32, #tpu.memory_space<vmem>>
    %76 = tpu.memref_squeeze %75 : memref<1x32xf32, #tpu.memory_space<vmem>> -> memref<32xf32, #tpu.memory_space<vmem>>
    %77 = tpu.memref_slice %arg10[%c0_i32_34] : memref<8x!tpu.dma_semaphore, #tpu.memory_space<semaphore_mem>> -> memref<1x!tpu.dma_semaphore, #tpu.memory_space<semaphore_mem>>
    %78 = tpu.memref_squeeze %77 : memref<1x!tpu.dma_semaphore, #tpu.memory_space<semaphore_mem>> -> memref<!tpu.dma_semaphore, #tpu.memory_space<semaphore_mem>>
    tpu.wait_dma2 semaphore(%78 : memref<!tpu.dma_semaphore, #tpu.memory_space<semaphore_mem>>) src(%74 : memref<32xf32, #tpu.memory_space<any>>) dst(%76 : memref<32xf32, #tpu.memory_space<vmem>>)
    %c0_i32_37 = arith.constant 0 : i32
    %c1_i32_38 = arith.constant 1 : i32
    %c1_i32_39 = arith.constant 1 : i32
    %c0_i32_40 = arith.constant 0 : i32
    %79 = tpu.memref_slice %arg2[%c0_i32_37, %c0_i32_40] : memref<100x32xf32, #tpu.memory_space<any>> -> memref<1x32xf32, #tpu.memory_space<any>>
    %80 = tpu.memref_squeeze %79 : memref<1x32xf32, #tpu.memory_space<any>> -> memref<32xf32, #tpu.memory_space<any>>
    %c0_i32_41 = arith.constant 0 : i32
    %81 = tpu.memref_slice %arg9[%c1_i32_38, %c0_i32_41] : memref<8x32xf32, #tpu.memory_space<vmem>> -> memref<1x32xf32, #tpu.memory_space<vmem>>
    %82 = tpu.memref_squeeze %81 : memref<1x32xf32, #tpu.memory_space<vmem>> -> memref<32xf32, #tpu.memory_space<vmem>>
    %83 = tpu.memref_slice %arg10[%c1_i32_39] : memref<8x!tpu.dma_semaphore, #tpu.memory_space<semaphore_mem>> -> memref<1x!tpu.dma_semaphore, #tpu.memory_space<semaphore_mem>>
    %84 = tpu.memref_squeeze %83 : memref<1x!tpu.dma_semaphore, #tpu.memory_space<semaphore_mem>> -> memref<!tpu.dma_semaphore, #tpu.memory_space<semaphore_mem>>
    tpu.wait_dma2 semaphore(%84 : memref<!tpu.dma_semaphore, #tpu.memory_space<semaphore_mem>>) src(%80 : memref<32xf32, #tpu.memory_space<any>>) dst(%82 : memref<32xf32, #tpu.memory_space<vmem>>)
    %c0_i32_42 = arith.constant 0 : i32
    %c2_i32_43 = arith.constant 2 : i32
    %c2_i32_44 = arith.constant 2 : i32
    %c0_i32_45 = arith.constant 0 : i32
    %85 = tpu.memref_slice %arg2[%c0_i32_42, %c0_i32_45] : memref<100x32xf32, #tpu.memory_space<any>> -> memref<1x32xf32, #tpu.memory_space<any>>
    %86 = tpu.memref_squeeze %85 : memref<1x32xf32, #tpu.memory_space<any>> -> memref<32xf32, #tpu.memory_space<any>>
    %c0_i32_46 = arith.constant 0 : i32
    %87 = tpu.memref_slice %arg9[%c2_i32_43, %c0_i32_46] : memref<8x32xf32, #tpu.memory_space<vmem>> -> memref<1x32xf32, #tpu.memory_space<vmem>>
    %88 = tpu.memref_squeeze %87 : memref<1x32xf32, #tpu.memory_space<vmem>> -> memref<32xf32, #tpu.memory_space<vmem>>
    %89 = tpu.memref_slice %arg10[%c2_i32_44] : memref<8x!tpu.dma_semaphore, #tpu.memory_space<semaphore_mem>> -> memref<1x!tpu.dma_semaphore, #tpu.memory_space<semaphore_mem>>
    %90 = tpu.memref_squeeze %89 : memref<1x!tpu.dma_semaphore, #tpu.memory_space<semaphore_mem>> -> memref<!tpu.dma_semaphore, #tpu.memory_space<semaphore_mem>>
    tpu.wait_dma2 semaphore(%90 : memref<!tpu.dma_semaphore, #tpu.memory_space<semaphore_mem>>) src(%86 : memref<32xf32, #tpu.memory_space<any>>) dst(%88 : memref<32xf32, #tpu.memory_space<vmem>>)
    %c0_i32_47 = arith.constant 0 : i32
    %c3_i32_48 = arith.constant 3 : i32
    %c3_i32_49 = arith.constant 3 : i32
    %c0_i32_50 = arith.constant 0 : i32
    %91 = tpu.memref_slice %arg2[%c0_i32_47, %c0_i32_50] : memref<100x32xf32, #tpu.memory_space<any>> -> memref<1x32xf32, #tpu.memory_space<any>>
    %92 = tpu.memref_squeeze %91 : memref<1x32xf32, #tpu.memory_space<any>> -> memref<32xf32, #tpu.memory_space<any>>
    %c0_i32_51 = arith.constant 0 : i32
    %93 = tpu.memref_slice %arg9[%c3_i32_48, %c0_i32_51] : memref<8x32xf32, #tpu.memory_space<vmem>> -> memref<1x32xf32, #tpu.memory_space<vmem>>
    %94 = tpu.memref_squeeze %93 : memref<1x32xf32, #tpu.memory_space<vmem>> -> memref<32xf32, #tpu.memory_space<vmem>>
    %95 = tpu.memref_slice %arg10[%c3_i32_49] : memref<8x!tpu.dma_semaphore, #tpu.memory_space<semaphore_mem>> -> memref<1x!tpu.dma_semaphore, #tpu.memory_space<semaphore_mem>>
    %96 = tpu.memref_squeeze %95 : memref<1x!tpu.dma_semaphore, #tpu.memory_space<semaphore_mem>> -> memref<!tpu.dma_semaphore, #tpu.memory_space<semaphore_mem>>
    tpu.wait_dma2 semaphore(%96 : memref<!tpu.dma_semaphore, #tpu.memory_space<semaphore_mem>>) src(%92 : memref<32xf32, #tpu.memory_space<any>>) dst(%94 : memref<32xf32, #tpu.memory_space<vmem>>)
    %c0_i32_52 = arith.constant 0 : i32
    %c4_i32_53 = arith.constant 4 : i32
    %c4_i32_54 = arith.constant 4 : i32
    %c0_i32_55 = arith.constant 0 : i32
    %97 = tpu.memref_slice %arg2[%c0_i32_52, %c0_i32_55] : memref<100x32xf32, #tpu.memory_space<any>> -> memref<1x32xf32, #tpu.memory_space<any>>
    %98 = tpu.memref_squeeze %97 : memref<1x32xf32, #tpu.memory_space<any>> -> memref<32xf32, #tpu.memory_space<any>>
    %c0_i32_56 = arith.constant 0 : i32
    %99 = tpu.memref_slice %arg9[%c4_i32_53, %c0_i32_56] : memref<8x32xf32, #tpu.memory_space<vmem>> -> memref<1x32xf32, #tpu.memory_space<vmem>>
    %100 = tpu.memref_squeeze %99 : memref<1x32xf32, #tpu.memory_space<vmem>> -> memref<32xf32, #tpu.memory_space<vmem>>
    %101 = tpu.memref_slice %arg10[%c4_i32_54] : memref<8x!tpu.dma_semaphore, #tpu.memory_space<semaphore_mem>> -> memref<1x!tpu.dma_semaphore, #tpu.memory_space<semaphore_mem>>
    %102 = tpu.memref_squeeze %101 : memref<1x!tpu.dma_semaphore, #tpu.memory_space<semaphore_mem>> -> memref<!tpu.dma_semaphore, #tpu.memory_space<semaphore_mem>>
    tpu.wait_dma2 semaphore(%102 : memref<!tpu.dma_semaphore, #tpu.memory_space<semaphore_mem>>) src(%98 : memref<32xf32, #tpu.memory_space<any>>) dst(%100 : memref<32xf32, #tpu.memory_space<vmem>>)
    %c0_i32_57 = arith.constant 0 : i32
    %c5_i32_58 = arith.constant 5 : i32
    %c5_i32_59 = arith.constant 5 : i32
    %c0_i32_60 = arith.constant 0 : i32
    %103 = tpu.memref_slice %arg2[%c0_i32_57, %c0_i32_60] : memref<100x32xf32, #tpu.memory_space<any>> -> memref<1x32xf32, #tpu.memory_space<any>>
    %104 = tpu.memref_squeeze %103 : memref<1x32xf32, #tpu.memory_space<any>> -> memref<32xf32, #tpu.memory_space<any>>
    %c0_i32_61 = arith.constant 0 : i32
    %105 = tpu.memref_slice %arg9[%c5_i32_58, %c0_i32_61] : memref<8x32xf32, #tpu.memory_space<vmem>> -> memref<1x32xf32, #tpu.memory_space<vmem>>
    %106 = tpu.memref_squeeze %105 : memref<1x32xf32, #tpu.memory_space<vmem>> -> memref<32xf32, #tpu.memory_space<vmem>>
    %107 = tpu.memref_slice %arg10[%c5_i32_59] : memref<8x!tpu.dma_semaphore, #tpu.memory_space<semaphore_mem>> -> memref<1x!tpu.dma_semaphore, #tpu.memory_space<semaphore_mem>>
    %108 = tpu.memref_squeeze %107 : memref<1x!tpu.dma_semaphore, #tpu.memory_space<semaphore_mem>> -> memref<!tpu.dma_semaphore, #tpu.memory_space<semaphore_mem>>
    tpu.wait_dma2 semaphore(%108 : memref<!tpu.dma_semaphore, #tpu.memory_space<semaphore_mem>>) src(%104 : memref<32xf32, #tpu.memory_space<any>>) dst(%106 : memref<32xf32, #tpu.memory_space<vmem>>)
    %c0_i32_62 = arith.constant 0 : i32
    %c6_i32_63 = arith.constant 6 : i32
    %c6_i32_64 = arith.constant 6 : i32
    %c0_i32_65 = arith.constant 0 : i32
    %109 = tpu.memref_slice %arg2[%c0_i32_62, %c0_i32_65] : memref<100x32xf32, #tpu.memory_space<any>> -> memref<1x32xf32, #tpu.memory_space<any>>
    %110 = tpu.memref_squeeze %109 : memref<1x32xf32, #tpu.memory_space<any>> -> memref<32xf32, #tpu.memory_space<any>>
    %c0_i32_66 = arith.constant 0 : i32
    %111 = tpu.memref_slice %arg9[%c6_i32_63, %c0_i32_66] : memref<8x32xf32, #tpu.memory_space<vmem>> -> memref<1x32xf32, #tpu.memory_space<vmem>>
    %112 = tpu.memref_squeeze %111 : memref<1x32xf32, #tpu.memory_space<vmem>> -> memref<32xf32, #tpu.memory_space<vmem>>
    %113 = tpu.memref_slice %arg10[%c6_i32_64] : memref<8x!tpu.dma_semaphore, #tpu.memory_space<semaphore_mem>> -> memref<1x!tpu.dma_semaphore, #tpu.memory_space<semaphore_mem>>
    %114 = tpu.memref_squeeze %113 : memref<1x!tpu.dma_semaphore, #tpu.memory_space<semaphore_mem>> -> memref<!tpu.dma_semaphore, #tpu.memory_space<semaphore_mem>>
    tpu.wait_dma2 semaphore(%114 : memref<!tpu.dma_semaphore, #tpu.memory_space<semaphore_mem>>) src(%110 : memref<32xf32, #tpu.memory_space<any>>) dst(%112 : memref<32xf32, #tpu.memory_space<vmem>>)
    %c0_i32_67 = arith.constant 0 : i32
    %c7_i32_68 = arith.constant 7 : i32
    %c7_i32_69 = arith.constant 7 : i32
    %c0_i32_70 = arith.constant 0 : i32
    %115 = tpu.memref_slice %arg2[%c0_i32_67, %c0_i32_70] : memref<100x32xf32, #tpu.memory_space<any>> -> memref<1x32xf32, #tpu.memory_space<any>>
    %116 = tpu.memref_squeeze %115 : memref<1x32xf32, #tpu.memory_space<any>> -> memref<32xf32, #tpu.memory_space<any>>
    %c0_i32_71 = arith.constant 0 : i32
    %117 = tpu.memref_slice %arg9[%c7_i32_68, %c0_i32_71] : memref<8x32xf32, #tpu.memory_space<vmem>> -> memref<1x32xf32, #tpu.memory_space<vmem>>
    %118 = tpu.memref_squeeze %117 : memref<1x32xf32, #tpu.memory_space<vmem>> -> memref<32xf32, #tpu.memory_space<vmem>>
    %119 = tpu.memref_slice %arg10[%c7_i32_69] : memref<8x!tpu.dma_semaphore, #tpu.memory_space<semaphore_mem>> -> memref<1x!tpu.dma_semaphore, #tpu.memory_space<semaphore_mem>>
    %120 = tpu.memref_squeeze %119 : memref<1x!tpu.dma_semaphore, #tpu.memory_space<semaphore_mem>> -> memref<!tpu.dma_semaphore, #tpu.memory_space<semaphore_mem>>
    tpu.wait_dma2 semaphore(%120 : memref<!tpu.dma_semaphore, #tpu.memory_space<semaphore_mem>>) src(%116 : memref<32xf32, #tpu.memory_space<any>>) dst(%118 : memref<32xf32, #tpu.memory_space<vmem>>)
    %c0 = arith.constant 0 : index
    %c0_72 = arith.constant 0 : index
    %121 = vector.load %arg5[%c0, %c0_72] : memref<8x1xi32, #tpu.memory_space<vmem>>, vector<8x1xi32>
    %cst = arith.constant 0.000000e+00 : f32
    %122 = vector.broadcast %cst : f32 to vector<8x32xf32>
    %c0_i32_73 = arith.constant 0 : i32
    %123 = vector.broadcast %c0_i32_73 : i32 to vector<8x1xi32>
    %124 = arith.cmpi eq, %121, %123 : vector<8x1xi32>
    %cst_74 = arith.constant 1.000000e+00 : f32
    %cst_75 = arith.constant 0.000000e+00 : f32
    %125 = vector.broadcast %cst_74 : f32 to vector<8x1xf32>
    %126 = vector.broadcast %cst_75 : f32 to vector<8x1xf32>
    %127 = arith.select %124, %125, %126 : vector<8x1xi1>, vector<8x1xf32>
    %c0_76 = arith.constant 0 : index
    %c0_77 = arith.constant 0 : index
    %128 = vector.load %arg4[%c0_76, %c0_77] : memref<2x32xf32, #tpu.memory_space<vmem>>, vector<1x32xf32>
    %129 = vector.shape_cast %128 : vector<1x32xf32> to vector<32xf32>
    %130 = vector.shape_cast %129 : vector<32xf32> to vector<1x32xf32>
    %131 = vector.broadcast %127 : vector<8x1xf32> to vector<8x32xf32>
    %132 = vector.broadcast %130 : vector<1x32xf32> to vector<8x32xf32>
    %133 = arith.mulf %131, %132 : vector<8x32xf32>
    %134 = arith.addf %122, %133 : vector<8x32xf32>
    %c1_i32_78 = arith.constant 1 : i32
    %135 = vector.broadcast %c1_i32_78 : i32 to vector<8x1xi32>
    %136 = arith.cmpi eq, %121, %135 : vector<8x1xi32>
    %cst_79 = arith.constant 1.000000e+00 : f32
    %cst_80 = arith.constant 0.000000e+00 : f32
    %137 = vector.broadcast %cst_79 : f32 to vector<8x1xf32>
    %138 = vector.broadcast %cst_80 : f32 to vector<8x1xf32>
    %139 = arith.select %136, %137, %138 : vector<8x1xi1>, vector<8x1xf32>
    %c1 = arith.constant 1 : index
    %c0_81 = arith.constant 0 : index
    %140 = vector.load %arg4[%c1, %c0_81] : memref<2x32xf32, #tpu.memory_space<vmem>>, vector<1x32xf32>
    %141 = vector.shape_cast %140 : vector<1x32xf32> to vector<32xf32>
    %142 = vector.shape_cast %141 : vector<32xf32> to vector<1x32xf32>
    %143 = vector.broadcast %139 : vector<8x1xf32> to vector<8x32xf32>
    %144 = vector.broadcast %142 : vector<1x32xf32> to vector<8x32xf32>
    %145 = arith.mulf %143, %144 : vector<8x32xf32>
    %146 = arith.addf %134, %145 : vector<8x32xf32>
    %c0_82 = arith.constant 0 : index
    %c0_83 = arith.constant 0 : index
    %147 = vector.load %arg9[%c0_82, %c0_83] : memref<8x32xf32, #tpu.memory_space<vmem>>, vector<8x32xf32>
    %c0_84 = arith.constant 0 : index
    %c0_85 = arith.constant 0 : index
    %148 = vector.load %arg3[%c0_84, %c0_85] : memref<8x32xf32, #tpu.memory_space<vmem>>, vector<8x32xf32>
    %149 = arith.addf %147, %148 : vector<8x32xf32>
    %150 = arith.addf %149, %146 : vector<8x32xf32>
    %c0_86 = arith.constant 0 : index
    %c0_87 = arith.constant 0 : index
    %151 = vector.load %arg6[%c0_86, %c0_87] : memref<1x32xf32, #tpu.memory_space<vmem>>, vector<1x32xf32>
    %c0_88 = arith.constant 0 : index
    %c0_89 = arith.constant 0 : index
    %152 = vector.load %arg7[%c0_88, %c0_89] : memref<1x32xf32, #tpu.memory_space<vmem>>, vector<1x32xf32>
    %cst_90 = arith.constant dense<0.000000e+00> : vector<8xf32>
    %153 = vector.multi_reduction <add>, %150, %cst_90 [1] : vector<8x32xf32> to vector<8xf32>
    %154 = vector.shape_cast %153 : vector<8xf32> to vector<8x1xf32>
    %cst_91 = arith.constant 3.200000e+01 : f32
    %155 = vector.broadcast %cst_91 : f32 to vector<8x1xf32>
    %156 = arith.divf %154, %155 : vector<8x1xf32>
    %157 = vector.broadcast %156 : vector<8x1xf32> to vector<8x32xf32>
    %158 = arith.subf %150, %157 : vector<8x32xf32>
    %159 = arith.mulf %158, %158 : vector<8x32xf32>
    %cst_92 = arith.constant dense<0.000000e+00> : vector<8xf32>
    %160 = vector.multi_reduction <add>, %159, %cst_92 [1] : vector<8x32xf32> to vector<8xf32>
    %161 = vector.shape_cast %160 : vector<8xf32> to vector<8x1xf32>
    %cst_93 = arith.constant 3.200000e+01 : f32
    %162 = vector.broadcast %cst_93 : f32 to vector<8x1xf32>
    %163 = arith.divf %161, %162 : vector<8x1xf32>
    %cst_94 = arith.constant 9.99999996E-13 : f32
    %164 = vector.broadcast %cst_94 : f32 to vector<8x1xf32>
    %165 = arith.addf %163, %164 : vector<8x1xf32>
    %166 = math.rsqrt %165 : vector<8x1xf32>
    %167 = vector.broadcast %166 : vector<8x1xf32> to vector<8x32xf32>
    %168 = arith.mulf %158, %167 : vector<8x32xf32>
    %169 = vector.broadcast %151 : vector<1x32xf32> to vector<8x32xf32>
    %170 = arith.mulf %168, %169 : vector<8x32xf32>
    %171 = vector.broadcast %152 : vector<1x32xf32> to vector<8x32xf32>
    %172 = arith.addf %170, %171 : vector<8x32xf32>
    %173 = arith.truncf %172 : vector<8x32xf32> to vector<8x32xbf16>
    %c0_95 = arith.constant 0 : index
    %c0_96 = arith.constant 0 : index
    %174 = vector.load %arg8[%c0_95, %c0_96] : memref<8x32xbf16, #tpu.memory_space<vmem>>, vector<8x32xbf16>
    tpu.vector_store %arg8[%c0_95, %c0_96], %173 {strides = array<i32>} : memref<8x32xbf16, #tpu.memory_space<vmem>>, vector<8x32xbf16>,
    return
  }
  func.func @transform_1(%arg0: i32, %arg1: memref<16xi32, #tpu.memory_space<smem>>) -> (i32, i32) {
    %c1_i32 = arith.constant 1 : i32
    %c0_i32 = arith.constant 0 : i32
    %0 = arith.cmpi eq, %c1_i32, %c0_i32 : i32
    %c1_i32_0 = arith.constant 1 : i32
    %1 = arith.select %0, %c1_i32_0, %c1_i32 : i32
    %2 = arith.remsi %arg0, %1 : i32
    %c0_i32_1 = arith.constant 0 : i32
    %3 = arith.cmpi ne, %2, %c0_i32_1 : i32
    %c0_i32_2 = arith.constant 0 : i32
    %4 = arith.cmpi slt, %2, %c0_i32_2 : i32
    %c0_i32_3 = arith.constant 0 : i32
    %5 = arith.cmpi slt, %1, %c0_i32_3 : i32
    %6 = arith.xori %4, %5 : i1
    %7 = arith.andi %6, %3 : i1
    %8 = arith.addi %2, %1 : i32
    %9 = arith.select %7, %8, %2 : i32
    %c0_i32_4 = arith.constant 0 : i32
    %c0_i32_5 = arith.constant 0 : i32
    return %9, %c0_i32_4 : i32, i32
  }
  func.func @transform_2(%arg0: i32, %arg1: memref<16xi32, #tpu.memory_space<smem>>) -> (i32, i32) {
    %c0_i32 = arith.constant 0 : i32
    %c0_i32_0 = arith.constant 0 : i32
    %c0_i32_1 = arith.constant 0 : i32
    return %c0_i32, %c0_i32_0 : i32, i32
  }
  func.func @transform_3(%arg0: i32, %arg1: memref<16xi32, #tpu.memory_space<smem>>) -> (i32, i32) {
    %c0_i32 = arith.constant 0 : i32
    %c0_i32_0 = arith.constant 0 : i32
    return %arg0, %c0_i32 : i32, i32
  }
  func.func @transform_4(%arg0: i32, %arg1: memref<16xi32, #tpu.memory_space<smem>>) -> (i32, i32) {
    %c0_i32 = arith.constant 0 : i32
    %c0_i32_0 = arith.constant 0 : i32
    %c0_i32_1 = arith.constant 0 : i32
    return %c0_i32, %c0_i32_0 : i32, i32
  }
  func.func @transform_5(%arg0: i32, %arg1: memref<16xi32, #tpu.memory_space<smem>>) -> (i32, i32) {
    %c0_i32 = arith.constant 0 : i32
    %c0_i32_0 = arith.constant 0 : i32
    %c0_i32_1 = arith.constant 0 : i32
    return %c0_i32, %c0_i32_0 : i32, i32
  }
  func.func @transform_6(%arg0: i32, %arg1: memref<16xi32, #tpu.memory_space<smem>>) -> (i32, i32) {
    %c0_i32 = arith.constant 0 : i32
    %c0_i32_0 = arith.constant 0 : i32
    return %arg0, %c0_i32 : i32, i32
  }
}

</mosaic_0001>

<bundles_post_ra>
// kernel: tpu_custom_call.1
= control target key start
LH: loop header
LB: loop body
LE: loop exit
PB: predicated region body
PF: predicated region fallthrough
CT: control target
= control target key end

     0   :  { %s1303_s0 = inlined_call_operand.vmem [shape: s32[16], index: 0, kind: input, shape index: {}]   ;;  %s1304_s1 = inlined_call_operand.vmem [shape: f32[100,32], index: 1, kind: input, shape index: {}]   ;;  %s1305_s2 = inlined_call_operand.vmem [shape: f32[16,32], index: 2, kind: input, shape index: {}]   ;;  %s1306_s3 = inlined_call_operand.vmem [shape: f32[2,32], index: 3, kind: input, shape index: {}]   ;;  %s1307_s4 = inlined_call_operand.vmem [shape: s32[16,1], index: 4, kind: input, shape index: {}]   ;;  %s1308_s5 = inlined_call_operand.vmem [shape: f32[1,32], index: 5, kind: input, shape index: {}]   ;;  %s1309_s6 = inlined_call_operand.vmem [shape: f32[1,32], index: 6, kind: input, shape index: {}]   ;;  %s1310_s7 = inlined_call_operand.hbm [shape: bf16[16,32], index: 7, kind: output, shape index: {}]  }
   0x1   :  { %s12_s26 = sshll.u32 %s1303_s0, 4  ;;  %s13_s26 = int_to_ptr.vmem [resolvable:$true] %s12_s26 }
   0x2   :  { %s1013_s27 = scalar_lea.vmem %s13_s26, 16  ;;  %p1018_p1 = scmp.lt.s32.totalorder %s13_s26, %s13_s26 }
   0x3   :  { %p1014_p0 = scmp.ne.s32.totalorder %s13_s26, %s1013_s27  ;;  %p1019_p2 = scmp.lt.s32.totalorder %s1013_s27, %s1013_s27 }
   0x5   :  { %p1020_p3 = por %p1019_p2, %p1018_p1 }
   0x7   :  { %p1021_p4 = pnand %p1020_p3, %p1014_p0 }
   0x9   :  { %1024 = shalt.err (!%p1021_p4)  }
   0xa   :  { %s1105_s28 = smov [#allocation5]  }
   0xb   :  { %15 = dma.vmem_to_smem %s13_s26, 16, %s1105_s28, [#allocation4] }
   0xc   :  { %1067 = dma.done.wait [#allocation4], 16 }
   0xd   :  { %1068 = vsyncadd [#allocation4], 4294967280 }
   0xe   :  { %17 = sfence }
   0xf   :  { %18 = vsyncpa [#allocation7], 0 }
  0x10   :  { %20 = vsyncpa [#allocation7 + $0x1], 0  ;;  %s1152_s29 = smov 0   ;;  %s1154_s30 = smov 0  }
  0x11   :  { %s1156_s0 = smov 0   ;;  %s1158_s8 = smov 0  }
  0x12 LB: > { %s1173_s9 = sadd.s32 4294967295, %s1103_s8   ;;  %s940_s10 = sadd.s32 4294967294, %s1103_s8   ;;  %s1103_s8 = sphi %s1158_s8, %s1322_s8   ;;  %s1099_s0 = sphi %s1156_s0, %s1321_s0   ;;  %s1095_s30 = sphi %s1154_s30, %s1320_s30   ;;  %s1091_s29 = sphi %s1152_s29, %s1319_s29  }
  0x13   : > { %s1177_s11 = sadd.s32 1, %s1103_s8   ;;  %s143_s12 = sadd.s32 1, %s1099_s0 }
  0x14   : > { %s140_s13 = ssub.s32 %s1103_s8, %s1177_s11  ;;  %p153_p5 = scmp.ne.s32.totalorder %s1099_s0, %s1095_s30 }
  0x15   : > { %p141_p6 = scmp.eq.s32.totalorder %s140_s13, 0  ;;  %p154_p7 = scmp.eq.s32.totalorder %s1173_s9, 1 }
  0x16   : > { %p159_p8 = scmp.ne.s32.totalorder %s1095_s30, %s1091_s29  ;;  %p160_p9 = scmp.eq.s32.totalorder %s940_s10, 1 }
  0x17   : > { %s1188_s14 = scalar_select %p141_p6, %s1099_s0, %s143_s12  }
  0x18   : > { %p1190_p10 = por %p154_p7, %p153_p5  ;;  %p1194_p11 = por %p160_p9, %p159_p8 }
  0x19   : > { %1312 = sst [smem:[#allocation26_spill]] %s1188_s14  ;;  %p943_p12 = scmp.ge.s32.totalorder %s1103_s8, 1 }
  0x1a   : > { %p197_p13 = scmp.lt.s32.totalorder %s1103_s8, 3 }
  0x1c   : > { %p198_p0 = pnand %p943_p12, %p197_p13 }
  0x1d   : > { %s1311_s17 = sand.u32 (!%p198_p0), 1, %s1095_s30   ;;  %p224_p1 = scmp.lt.s32.totalorder (!%p198_p0), %s1173_s9, 1 }
  0x1e   : > { %201 = sbr.rel (%p198_p0) target bundleno = 587 (0x24b), region = 40  ;;  %s1204_s18 = sshll.u32 (!%p198_p0), %s1311_s17, 2 }
  0x1f   : > { %s1207_s19 = sshll.u32 (!%p198_p0), %s1173_s9, 3 }
  0x20   : > { %s229_s20 = sld [smem:[#allocation5 + %s1207_s19]] (!%p198_p0) }
  0x23   : > { %s225_s21 = scalar_select %p224_p1, %s1173_s9, 1 }
  0x25   : > { %s945_s22 = sshll.u32 %s225_s21, 3 }
  0x26   : > { %s1214_s25 = scalar_lea.vmem %s1307_s4, %s945_s22  ;;  %s230_s28 = scalar_lea.vmem %s1304_s1, %s229_s20 }
  0x27   : > { %v249_v0 = vld [vmem:[%s230_s28] sm:$0x1] }
  0x28   : > { %250 = vst [vmem:[#allocation2] sm:$0x1] %v249_v0 }
  0x29   : > { %276 = vsyncadd [#allocation3], 16  ;;  %s277_s12 = sadd.s32 1, %s1207_s19 }
  0x2a   : > { %s278_s13 = sld [smem:[#allocation5 + %s277_s12]] }
  0x30   : > { %s279_s21 = scalar_lea.vmem %s1304_s1, %s278_s13 }
  0x31   : > { %v300_v1 = vld [vmem:[%s279_s21] sm:$0x1] }
  0x32   : > { %301 = vst [vmem:[#allocation2 + $0x1] sm:$0x1] %v300_v1 }
  0x33   : > { %327 = vsyncadd [#allocation3 + $0x1], 16  ;;  %s328_s22 = sadd.s32 2, %s1207_s19 }
  0x34   : > { %s329_s23 = sld [smem:[#allocation5 + %s328_s22]] }
  0x3a   : > { %s330_s20 = scalar_lea.vmem %s1304_s1, %s329_s23 }
  0x3b   : > { %v351_v2 = vld [vmem:[%s330_s20] sm:$0x1] }
  0x3c   : > { %352 = vst [vmem:[#allocation2 + $0x2] sm:$0x1] %v351_v2 }
  0x3d   : > { %378 = vsyncadd [#allocation3 + $0x2], 16  ;;  %s379_s27 = sadd.s32 3, %s1207_s19 }
  0x3e   : > { %s380_s28 = sld [smem:[#allocation5 + %s379_s27]] }
  0x44   : > { %s381_s14 = scalar_lea.vmem %s1304_s1, %s380_s28 }
  0x45   : > { %v402_v3 = vld [vmem:[%s381_s14] sm:$0x1] }
  0x46   : > { %403 = vst [vmem:[#allocation2 + $0x3] sm:$0x1] %v402_v3 }
  0x47   : > { %429 = vsyncadd [#allocation3 + $0x3], 16  ;;  %s430_s17 = sadd.s32 4, %s1207_s19 }
  0x48   : > { %s431_s13 = sld [smem:[#allocation5 + %s430_s17]] }
  0x4e   : > { %s432_s23 = scalar_lea.vmem %s1304_s1, %s431_s13 }
  0x4f   : > { %v453_v4 = vld [vmem:[%s432_s23] sm:$0x1] }
  0x50   : > { %454 = vst [vmem:[#allocation2 + $0x4] sm:$0x1] %v453_v4 }
  0x51   : > { %480 = vsyncadd [#allocation3 + $0x4], 16  ;;  %s481_s24 = sadd.s32 5, %s1207_s19 }
  0x52   : > { %s482_s26 = sld [smem:[#allocation5 + %s481_s24]] }
  0x58   : > { %s483_s10 = scalar_lea.vmem %s1304_s1, %s482_s26 }
  0x59   : > { %v504_v5 = vld [vmem:[%s483_s10] sm:$0x1] }
  0x5a   : > { %505 = vst [vmem:[#allocation2 + $0x5] sm:$0x1] %v504_v5 }
  0x5b   : > { %531 = vsyncadd [#allocation3 + $0x5], 16  ;;  %s532_s28 = sadd.s32 6, %s1207_s19 }
  0x5c   : > { %s533_s12 = sld [smem:[#allocation5 + %s532_s28]] }
  0x62   : > { %s534_s13 = scalar_lea.vmem %s1304_s1, %s533_s12 }
  0x63   : > { %v555_v6 = vld [vmem:[%s534_s13] sm:$0x1] }
  0x64   : > { %556 = vst [vmem:[#allocation2 + $0x6] sm:$0x1] %v555_v6 }
  0x65   : > { %582 = vsyncadd [#allocation3 + $0x6], 16  ;;  %s583_s21 = sadd.s32 7, %s1207_s19 }
  0x66   : > { %s584_s22 = sld [smem:[#allocation5 + %s583_s21]] }
  0x6c   : > { %s585_s26 = scalar_lea.vmem %s1304_s1, %s584_s22 }
  0x6d   : > { %v606_v7 = vld [vmem:[%s585_s26] sm:$0x1] }
  0x6e   : > { %607 = vst [vmem:[#allocation2 + $0x7] sm:$0x1] %v606_v7 }
  0x6f   : > { %633 = vsyncadd [#allocation3 + $0x7], 16 }
  0x70   : > { %1069 = dma.done.wait [#allocation3], 16 }
  0x71   : > { %1070 = vsyncadd [#allocation3], 4294967280 }
  0x72   : > { %1071 = dma.done.wait [#allocation3 + $0x1], 16 }
  0x73   : > { %1072 = vsyncadd [#allocation3 + $0x1], 4294967280 }
  0x74   : > { %1073 = dma.done.wait [#allocation3 + $0x2], 16 }
  0x75   : > { %1074 = vsyncadd [#allocation3 + $0x2], 4294967280 }
  0x76   : > { %1075 = dma.done.wait [#allocation3 + $0x3], 16 }
  0x77   : > { %1076 = vsyncadd [#allocation3 + $0x3], 4294967280 }
  0x78   : > { %1077 = dma.done.wait [#allocation3 + $0x4], 16 }
  0x79   : > { %1078 = vsyncadd [#allocation3 + $0x4], 4294967280 }
  0x7a   : > { %1079 = dma.done.wait [#allocation3 + $0x5], 16 }
  0x7b   : > { %1080 = vsyncadd [#allocation3 + $0x5], 4294967280 }
  0x7c   : > { %1081 = dma.done.wait [#allocation3 + $0x6], 16 }
  0x7d   : > { %1082 = vsyncadd [#allocation3 + $0x6], 4294967280 }
  0x7e   : > { %1083 = dma.done.wait [#allocation3 + $0x7], 16 }
  0x7f   : > { %1084 = vsyncadd [#allocation3 + $0x7], 4294967280  ;;  %v1106_v8 = vmov 0   ;;  %v650_v9 = vld [vmem:[%s1214_s25] sm:$0xff]  ;;  %v1107_v10 = vmov 0.0   ;;  %vm685_vm2 = vcmask 261120  }
  0x80   : > { %1005 = vset.pattern.permute.xlu0 %v1106_v8  ;;  %vm651_vm0 = vcmp.eq.s32.totalorder %v650_v9, 0  ;;  %vm665_vm1 = vcmp.eq.s32.totalorder %v650_v9, 1  ;;  %v947_v14 = vld [vmem:[%s1306_s3] ss:$0 sm:$0xff]  ;;  %v948_v15 = vld [vmem:[%s1306_s3 + $0x1] ss:$0 sm:$0xff] }
  0x81   : > { %v652_v11 = vsel %vm651_vm0, 1.0, %v1107_v10  ;;  %v666_v12 = vsel %vm665_vm1, 1.0, %v1107_v10  ;;  %v679_v17 = vld [vmem:[#allocation2] sm:$0xff]  ;;  %s952_s21 = sshll.u32 %s1173_s9, 6  ;;  %s1315_s22 = scalar_lea.vmem [#allocation6], %s1204_s18  ;;  %vm715_vm3 = vcmask 257024  }
  0x82   : > { %v1006_v13 = vpack.i.bf16 %v666_v12, %v652_v11  ;;  %v680_v18 = vld [vmem:[%s1305_s2] sm:$0xff]  ;;  %s731_s23 = sshll.u32 %s1315_s22, 4  ;;  %s729_s19 = scalar_lea.hbm %s1310_s7, %s952_s21  ;;  %s732_s23 = int_to_ptr.vmem [resolvable:$true] %s731_s23 }
  0x83   : > { %v681_v23 = vadd.f32 %v680_v18, %v679_v17  ;;  %v949_v36 = vld [vmem:[%s1308_s5] ss:$0 sm:$0xff]  ;;  %s1316_s20 = smov %s1315_s22  ;;  %s1317_s27 = sand.u32 1, %s1095_s30  }
  0x84   : > { %1007 = vperm.xlu0 %1005, %v1006_v13   ;;  %v950_v38 = vld [vmem:[%s1309_s6] ss:$0 sm:$0xff]  ;;  %s718_s10 = scalar_lea.sflag [#allocation7], %s1317_s27  ;;  %s1025_s28 = scalar_lea.vmem %s732_s23, 64 }
  0x85   : > { %p1026_p2 = scmp.ne.s32.totalorder %s732_s23, %s1025_s28  ;;  %s1108_s9 = smov [#allocation6]  }
  0x86   : > { %s1029_s12 = sshll.u32 %s1108_s9, 4  ;;  %s1030_s12 = int_to_ptr.vmem [resolvable:$false] %s1029_s12 }
  0x87   : > { %p1027_p3 = pnand %p1026_p2, %p1190_p10  ;;  %s1031_s25 = scalar_lea.vmem %s1030_s12, 128 }
  0x88   : > { %p1032_p5 = scmp.lt.s32.totalorder %s732_s23, %s1030_s12  ;;  %p1033_p6 = scmp.lt.s32.totalorder %s1031_s25, %s1025_s28 }
  0x89   : > { %p1028_p4 = pneg %p1027_p3 }
  0x8a   : > { %p1034_p7 = por %p1033_p6, %p1032_p5 }
  0x8c   : > { %p1035_p8 = pnand %p1034_p7, %p1028_p4 }
  0xff   : > { %v1008_v16 = vpop.permute.xlu0 %1007 }
 0x100   : > { %v1010_v19 = vunpack.i.h.bf16 %v1008_v16  ;;  %v1009_v20 = vunpack.i.l.bf16 %v1008_v16 }
 0x102   : > { %v677_v21 = vmul.f32 %v1010_v19, %v948_v15  ;;  %v663_v22 = vmul.f32 %v1009_v20, %v947_v14 }
 0x104   : > { %v678_v24 = vadd.f32 %v677_v21, %v663_v22 }
 0x106   : > { %v682_v25 = vadd.f32 %v681_v23, %v678_v24 }
 0x108   : > { %v686_v26 = vsel %vm685_vm2, %v682_v25, 0.0 }
 0x109   : > { %687 = vadd.xlane.f32.xlu0 %v686_v26 }
 0x192   : > { %v688_v27 = vpop.xlane.xlu0 %687 }
 0x193   : > { %v690_v28 = vmul.f32 0.03125, %v688_v27 }
 0x195   : > { %v691_v29 = vsub.f32 %v682_v25, %v690_v28 }
 0x197   : > { %v692_v30 = vmul.f32 %v691_v29, %v691_v29 }
 0x199   : > { %v693_v31 = vsel %vm685_vm2, %v692_v30, 0.0 }
 0x19a   : > { %694 = vadd.xlane.f32.xlu1 %v693_v31 }
 0x223   : > { %v695_v32 = vpop.xlane.xlu1 %694 }
 0x224   : > { %v696_v33 = vmul.f32 0.03125, %v695_v32 }
 0x226   : > { %v697_v34 = vadd.f32 1e-12, %v696_v33 }
 0x228   : > { %1011 = vrsqrt.f32 %v697_v34 }
 0x235   : > { %v1012_v35 = vpop.eup %1011 }
 0x236   : > { %v699_v37 = vmul.f32 %v1012_v35, %v691_v29 }
 0x238   : > { %v706_v39 = vmul.f32 %v949_v36, %v699_v37 }
 0x23a   : > { %v713_v40 = vadd.f32 %v950_v38, %v706_v39 }
 0x23c   : > { %v714_v41 = vpack.c.bf16 %v713_v40, %v713_v40 }
 0x23e   : > { %716 = vst.msk [vmem:[%s1316_s20] sm:$0xf] %vm715_vm3, %v714_v41 }
 0x23f   : > { %1038 = shalt.err (!%p1035_p8)
}
 0x240   : > { %s1039_s14 = scalar_lea.hbm %s729_s19, 64  ;;  %s1043_s13 = scalar_lea.hbm %s1310_s7, 128 }
 0x241   : > { %p1040_p9 = scmp.ne.s32.totalorder %s729_s19, %s1039_s14  ;;  %p1044_p0 = scmp.lt.s32.totalorder %s729_s19, %s1310_s7 }
 0x242   : > { %p1045_p1 = scmp.lt.s32.totalorder %s1043_s13, %s1039_s14 }
 0x243   : > { %p1041_p12 = pnand %p1040_p9, %p1190_p10 }
 0x244   : > { %p1046_p2 = por %p1045_p1, %p1044_p0 }
 0x245   : > { %p1042_p13 = pneg %p1041_p12 }
 0x247   : > { %p1047_p3 = pnand %p1046_p2, %p1042_p13 }
 0x249   : > { %1050 = shalt.err (!%p1047_p3)
}
 0x24a   : > { %963 = dma.vmem_to_hbm [thread:$0]  (%p1190_p10), %s732_s23, 64, %s729_s19, %s718_s10  }
 0x24b PF: > { %p969_p4 = scmp.ge.s32.totalorder %s1103_s8, 2  ;;  %s743_s24 = sand.u32 1, %s1091_s29  }
 0x24c   : > { %s744_s26 = scalar_lea.sflag [#allocation7], %s743_s24 }
 0x24d   : > { %p966_p5 = pnand %p969_p4, %p1194_p11 }
 0x24f   : > { %p967_p6 = pneg %p966_p5 }
 0x251   : > { %1086 = dma.done.wait (%p967_p6), %s744_s26, 64  }
 0x252   : > { %1088 = vsyncadd (%p967_p6), %s744_s26, 4294967232  ;;  %s1318_s20 = sld [smem:[#allocation26_spill]]  ;;  %p23_p7 = scmp.ge.s32.totalorder %s1177_s11, 4  }
 0x253   : > { %s1319_s29 = smov %s1095_s30  ;;  %s1320_s30 = smov %s1099_s0 }
 0x254   : > { %s1322_s8 = smov %s1177_s11  ;;  %25 = sbr.rel (!%p23_p7) target bundleno = 18 (0x12), region = 424 }
 0x258   : > { %s1321_s0 = smov %s1318_s20 }
 0x259   :  { %749 = vsyncpa [#allocation7], 1 }
 0x25a   :  { %751 = vsyncpa [#allocation7 + $0x1], 1 }
 0x25b   :  { %752 = vsyncmov [#allocation3] }
 0x25e   :  { %s753_s8 = vpop.sfrf %752 }
 0x25f   :  { %p955_p10 = scmp.ne.s32.totalorder %s753_s8, 0 }
 0x261   :  { %757 = shalt.err (%p955_p10)  }
 0x262   :  { %759 = vsyncmov [#allocation3 + $0x1] }
 0x265   :  { %s760_s15 = vpop.sfrf %759 }
 0x266   :  { %p956_p11 = scmp.ne.s32.totalorder %s760_s15, 0 }
 0x268   :  { %764 = shalt.err (%p956_p11)  }
 0x269   :  { %766 = vsyncmov [#allocation3 + $0x2] }
 0x26c   :  { %s767_s16 = vpop.sfrf %766 }
 0x26d   :  { %p957_p8 = scmp.ne.s32.totalorder %s767_s16, 0 }
 0x26f   :  { %771 = shalt.err (%p957_p8)  }
 0x270   :  { %773 = vsyncmov [#allocation3 + $0x3] }
 0x273   :  { %s774_s23 = vpop.sfrf %773 }
 0x274   :  { %p958_p9 = scmp.ne.s32.totalorder %s774_s23, 0 }
 0x276   :  { %778 = shalt.err (%p958_p9)  }
 0x277   :  { %780 = vsyncmov [#allocation3 + $0x4] }
 0x27a   :  { %s781_s11 = vpop.sfrf %780 }
 0x27b   :  { %p959_p12 = scmp.ne.s32.totalorder %s781_s11, 0 }
 0x27d   :  { %785 = shalt.err (%p959_p12)  }
 0x27e   :  { %787 = vsyncmov [#allocation3 + $0x5] }
 0x281   :  { %s788_s1 = vpop.sfrf %787 }
 0x282   :  { %p960_p13 = scmp.ne.s32.totalorder %s788_s1, 0 }
 0x284   :  { %792 = shalt.err (%p960_p13)  }
 0x285   :  { %794 = vsyncmov [#allocation3 + $0x6] }
 0x288   :  { %s795_s2 = vpop.sfrf %794 }
 0x289   :  { %p961_p0 = scmp.ne.s32.totalorder %s795_s2, 0 }
 0x28b   :  { %799 = shalt.err (%p961_p0)  }
 0x28c   :  { %801 = vsyncmov [#allocation3 + $0x7] }
 0x28f   :  { %s802_s3 = vpop.sfrf %801 }
 0x290   :  { %p962_p1 = scmp.ne.s32.totalorder %s802_s3, 0 }
 0x292   :  { %806 = shalt.err (%p962_p1)  }

</bundles_post_ra>
